<compile_context>
chip_gen: v6e
topology: v6e:2x2x1
jax: 0.10.0
libtpu: 0.0.40
codegen_flags: <defaults>
</compile_context>

<pallas_src>
import jax
import jax.numpy as jnp
from jax.experimental import pallas as pl
from jax.experimental.pallas import tpu as pltpu


def _fermi_dirac_kernel(params_ref, dist_ref, out_ref):
    # params_ref is a tiny SMEM array: [r, 1/t].
    r = params_ref[0]
    inv_t = params_ref[1]
    d = dist_ref[...].astype(jnp.float32)      # compute in f32 even for bf16 I/O
    z = (d - r) * inv_t                        # VPU elementwise
    denom = jnp.exp(z) + 1.0                   # EUP exp + VPU add
    probs = 1.0 / denom                        # exact divide; hidden under DMA
    out_ref[...] = probs.astype(out_ref.dtype)


def _round_up(x, m):
    return ((x + m - 1) // m) * m


def _pick_blocks(n_rows, n_cols, itemsize, tile_bytes):
    """Pick (bn, bm): full rows when they fit the tile budget, (8,128)-legal."""
    row_bytes = n_cols * itemsize
    if 8 * row_bytes <= tile_bytes:
        # Full-row blocks: contiguous HBM DMAs, unmasked lane-dense stores.
        bm = n_cols
        rows_fit = max(8, (tile_bytes // row_bytes) // 8 * 8)
        # Keep at least two row blocks so v7x's two TensorCores both get work.
        half_rows = _round_up(pl.cdiv(n_rows, 2), 8)
        bn = min(rows_fit, half_rows, n_rows)
    else:
        # Extremely long rows: also split the lane dim (multiple of 128 lanes).
        bn = min(8, n_rows)
        lanes_fit = max(128, (tile_bytes // (8 * itemsize)) // 128 * 128)
        bm = min(lanes_fit, n_cols)
    # bn/bm are multiples of (8, 128) or equal to the full dims by construction.
    return bn, bm


def fermi_dirac_decoder(dist, r=2.0, t=1.0, *, tile_bytes=4 * 1024 * 1024):
    """Elementwise Fermi-Dirac edge-probability decoder.

    Accepts any-rank `dist` (flattened to 2-D internally, last dim -> lanes).
    Output dtype matches input dtype; math is done in f32 inside the kernel.
    """
    orig_shape = dist.shape
    if dist.ndim == 0:
        dist2d = dist.reshape(1, 1)
    elif dist.ndim == 1:
        dist2d = dist.reshape(1, -1)
    else:
        dist2d = dist.reshape(-1, orig_shape[-1])
    N, M = dist2d.shape

    itemsize = jnp.dtype(dist2d.dtype).itemsize
    bn, bm = _pick_blocks(N, M, itemsize, tile_bytes)
    grid = (pl.cdiv(N, bn), pl.cdiv(M, bm))

    # Runtime SMEM scalars: no recompilation for different (r, t) values.
    params = jnp.asarray([r, 1.0 / t], dtype=jnp.float32)

    out2d = pl.pallas_call(
        _fermi_dirac_kernel,
        out_shape=jax.ShapeDtypeStruct((N, M), dist2d.dtype),
        grid=grid,
        in_specs=[
            pl.BlockSpec(memory_space=pltpu.MemorySpace.SMEM),  # [r, 1/t]
            pl.BlockSpec((bn, bm), lambda i, j: (i, j)),        # dist tile
        ],
        out_specs=pl.BlockSpec((bn, bm), lambda i, j: (i, j)),
        compiler_params=pltpu.CompilerParams(
            dimension_semantics=("parallel", "parallel"),
            vmem_limit_bytes=32 * 1024 * 1024,
        ),
    )(params, dist2d)

    return out2d.reshape(orig_shape)


if __name__ == "__main__":
    # FermiDiracDecoder has no learned parameters; r=2, t=1 as in the module.
    key = jax.random.PRNGKey(0)
    # Small pairwise-distance matrix (e.g. 256 nodes x 512 candidates).
    dist = jax.random.uniform(key, (256, 512), dtype=jnp.float32) * 5.0

    r, t = 2.0, 1.0
    probs = fermi_dirac_decoder(dist, r=r, t=t)
    probs = jax.block_until_ready(probs)

    # Pure-JAX reference (same math as the PyTorch forward).
    ref = 1.0 / (jnp.exp((dist - r) / t) + 1.0)
    assert probs.shape == dist.shape and probs.dtype == dist.dtype
    # Exact f32 math inside the kernel -> tight tolerance is safe.
    assert jnp.allclose(probs, ref, atol=1e-5, rtol=1e-5)

    print("KERNEL_OK")
</pallas_src>

<mosaic_0001>
module attributes {stable_mosaic.version = 11 : i64} {
  func.func @_fermi_dirac_kernel(%arg0: i32, %arg1: i32, %arg2: memref<2xf32, #tpu.memory_space<smem>>, %arg3: memref<128x512xf32, #tpu.memory_space<vmem>>, %arg4: memref<128x512xf32, #tpu.memory_space<vmem>>) attributes {dimension_semantics = [#tpu.dimension_semantics<parallel>, #tpu.dimension_semantics<parallel>], iteration_bounds = array<i64: 2, 1>, scalar_prefetch = 0 : i64, scratch_operands = 0 : i64, tpu.core_type = #tpu.core_type<tc>, window_params = [{transform_indices = @transform_0, window_bounds = array<i64: 2>}, {transform_indices = @transform_1, window_bounds = array<i64: 128, 512>}, {transform_indices = @transform_2, window_bounds = array<i64: 128, 512>}]} {
    %c0 = arith.constant 0 : index
    %0 = memref.load %arg2[%c0] : memref<2xf32, #tpu.memory_space<smem>>
    %c1 = arith.constant 1 : index
    %1 = memref.load %arg2[%c1] : memref<2xf32, #tpu.memory_space<smem>>
    %c0_0 = arith.constant 0 : index
    %c0_1 = arith.constant 0 : index
    %2 = vector.load %arg3[%c0_0, %c0_1] : memref<128x512xf32, #tpu.memory_space<vmem>>, vector<128x512xf32>
    %3 = vector.broadcast %0 : f32 to vector<128x512xf32>
    %4 = arith.subf %2, %3 : vector<128x512xf32>
    %5 = vector.broadcast %1 : f32 to vector<128x512xf32>
    %6 = arith.mulf %4, %5 : vector<128x512xf32>
    %7 = math.exp %6 : vector<128x512xf32>
    %cst = arith.constant 1.000000e+00 : f32
    %8 = vector.broadcast %cst : f32 to vector<128x512xf32>
    %9 = arith.addf %7, %8 : vector<128x512xf32>
    %cst_2 = arith.constant 1.000000e+00 : f32
    %10 = vector.broadcast %cst_2 : f32 to vector<128x512xf32>
    %11 = arith.divf %10, %9 : vector<128x512xf32>
    %c0_3 = arith.constant 0 : index
    %c0_4 = arith.constant 0 : index
    %12 = vector.load %arg4[%c0_3, %c0_4] : memref<128x512xf32, #tpu.memory_space<vmem>>, vector<128x512xf32>
    tpu.vector_store %arg4[%c0_3, %c0_4], %11 {strides = array<i32>} : memref<128x512xf32, #tpu.memory_space<vmem>>, vector<128x512xf32>,
    return
  }
  func.func @transform_0(%arg0: i32, %arg1: i32) -> i32 {
    %c0_i32 = arith.constant 0 : i32
    %c0_i32_0 = arith.constant 0 : i32
    return %c0_i32 : i32
  }
  func.func @transform_1(%arg0: i32, %arg1: i32) -> (i32, i32) {
    %c0_i32 = arith.constant 0 : i32
    return %arg0, %arg1 : i32, i32
  }
  func.func @transform_2(%arg0: i32, %arg1: i32) -> (i32, i32) {
    %c0_i32 = arith.constant 0 : i32
    return %arg0, %arg1 : i32, i32
  }
}

</mosaic_0001>

<bundles_post_ra>
// kernel: tpu_custom_call.1
= control target key start
LH: loop header
LB: loop body
LE: loop exit
PB: predicated region body
PF: predicated region fallthrough
CT: control target
= control target key end

     0   :  { %s1829_s0 = inlined_call_operand.hbm [shape: f32[2], index: 0, kind: input, shape index: {}]   ;;  %s1830_s1 = inlined_call_operand.hbm [shape: f32[256,512], index: 1, kind: input, shape index: {}]   ;;  %s1831_s2 = inlined_call_operand.hbm [shape: f32[256,512], index: 2, kind: output, shape index: {}]  }
   0x1   :  { %1832 = sst [smem:[#allocation11_spill]] %s1829_s0 }
   0x2   :  { %7 = vsyncpa [#allocation5], 0 }
   0x3   :  { %8 = vsyncpa [#allocation3], 0 }
   0x4   :  { %10 = vsyncpa [#allocation3 + $0x1], 0 }
   0x5   :  { %11 = vsyncpa [#allocation4], 0 }
   0x6   :  { %13 = vsyncpa [#allocation4 + $0x1], 0  ;;  %s1397_s9 = smov 0   ;;  %s1399_s10 = smov 0  }
   0x7   :  { %s1401_s11 = smov 0   ;;  %s1403_s12 = smov 0  }
   0x8   :  { %s1405_s13 = smov 0   ;;  %s1407_s14 = smov 0  }
   0x9 LB: > { %s893_s15 = sadd.s32 4294967295, %s1373_s14   ;;  %s894_s16 = sadd.s32 4294967294, %s1373_s14   ;;  %s1373_s14 = sphi %s1407_s14, %s19_s14   ;;  %s1369_s13 = sphi %s1405_s13, %s1846_s13   ;;  %s1365_s12 = sphi %s1403_s12, %s1845_s12   ;;  %s1361_s11 = sphi %s1401_s11, %s1844_s11   ;;  %s1357_s10 = sphi %s1399_s10, %s1843_s10   ;;  %s1353_s9 = sphi %s1397_s9, %s1842_s9  }
   0xa   : > { %s61_s17 = sadd.s32 1, %s1361_s11  ;;  %p68_p0 = scmp.ne.s32.totalorder %s1361_s11, %s1357_s10 }
   0xb   : > { %p69_p1 = scmp.eq.s32.totalorder %s1373_s14, 0  ;;  %p74_p2 = scmp.ne.s32.totalorder %s1357_s10, %s1353_s9 }
   0xc   : > { %p1435_p3 = scmp.eq.s32.totalorder %s893_s15, 0  ;;  %p100_p4 = scmp.eq.s32.totalorder %s893_s15, 1 }
   0xd   : > { %p70_p5 = por %p69_p1, %p68_p0  ;;  %p106_p6 = scmp.eq.s32.totalorder %s894_s16, 1 }
   0xe   : > { %p1441_p7 = por %p1435_p3, %p74_p2  ;;  %p1445_p8 = por %p100_p4, %p68_p0 }
   0xf   : > { %p1449_p9 = por %p106_p6, %p74_p2  ;;  %p895_p10 = scmp.ge.s32.totalorder %s1373_s14, 1 }
  0x10   : > { %p113_p11 = scmp.lt.s32.totalorder %s1373_s14, 3  ;;  %p938_p1 = scmp.lt.s32.totalorder %s1373_s14, 2 }
  0x11   : > { %s1836_s21 = scalar_select %p1449_p9, 1, 0 }
  0x12   : > { %p1456_p13 = pnand %p895_p10, %p113_p11  ;;  %s135_s23 = sand.u32 1, %s1361_s11  }
  0x13   : > { %p1464_p2 = pnand %p938_p1, %p70_p5  ;;  %s31_s25 = sadd.s32 1, %s1369_s13 }
  0x14   : > { %p925_p0 = pneg %p1456_p13  ;;  %s898_s26 = sshll.u32 %s135_s23, 9 }
  0x15   : > { %p33_p6 = scmp.ge.s32.totalorder %s31_s25, 2  ;;  %s1375_s27 = smov [#allocation2]  }
  0x16   : > { %p926_p4 = pnand %p925_p0, %p1435_p3  ;;  %s1839_s0 = sld [smem:[#allocation11_spill]] }
  0x17   : > { %s1848_s25 = smov (%p33_p6, %s31_s25), 0  ;;  %s914_s30 = sshll.u32 %s1369_s13, 13 }
  0x18   : > { %s56_s3 = ssub.s32 %s1369_s13, %s1848_s25  ;;  %s148_s6 = scalar_lea.hbm %s1830_s1, %s914_s30 }
  0x19   : > { %p59_p5 = scmp.eq.s32.totalorder %s56_s3, 0  ;;  %s139_s7 = scalar_lea.vmem [#allocation6], %s898_s26 }
  0x1a   : > { %s149_s8 = sshll.u32 %s139_s7, 4  ;;  %s136_s16 = scalar_lea.sflag [#allocation3], %s135_s23  ;;  %s150_s8 = int_to_ptr.vmem [resolvable:$true] %s149_s8 }
  0x1b   : > { %s1485_s15 = scalar_select %p59_p5, %s1361_s11, %s61_s17  }
  0x1c   : > { %928 = dma.hbm_to_smem (!%p926_p4), %s1839_s0, 16, %s1375_s27, [#allocation5]  }
  0x1d   : > { %p1263_p10 = pneg %p1464_p2  ;;  %s1274_s27 = scalar_lea.vmem %s150_s8, 8192 }
  0x1e   : > { %p1275_p11 = scmp.ne.s32.totalorder %s150_s8, %s1274_s27  ;;  %s1376_s28 = smov [#allocation6]  }
  0x1f   : > { %s1279_s29 = sshll.u32 %s1376_s28, 4  ;;  %s1280_s29 = int_to_ptr.vmem [resolvable:$false] %s1279_s29 }
  0x20   : > { %p1277_p1 = pnand %p1275_p11, %p1263_p10  ;;  %s1281_s0 = scalar_lea.vmem %s1280_s29, 16384 }
  0x21   : > { %p1282_p4 = scmp.lt.s32.totalorder %s150_s8, %s1280_s29  ;;  %p1283_p6 = scmp.lt.s32.totalorder %s1281_s0, %s1274_s27 }
  0x22   : > { %p1278_p0 = pneg %p1277_p1 }
  0x23   : > { %p1284_p12 = por %p1283_p6, %p1282_p4 }
  0x25   : > { %p1285_p9 = pnand %p1284_p12, %p1278_p0 }
  0x27   : > { %1288 = shalt.err (!%p1285_p9)
}
  0x28   : > { %s1377_s26 = smov 512   ;;  %s1378_s17 = smov 32  }
  0x29   : > { %932 = dma.hbm_to_vmem [thread:$0]  (!%p1464_p2), %s148_s6, 8192, %s150_s8, %s136_s16, %s1377_s26, %s1377_s26, %s1378_s17  }
  0x2a   : > { %161 = sbr.rel (%p1456_p13) target bundleno = 222 (0xde), region = 28 }
  0x2f   : > { %1340 = dma.done.wait (%p1435_p3), [#allocation5], 16  }
  0x30   : > { %1342 = vsyncadd (%p1435_p3), [#allocation5], 4294967280  ;;  %s1498_s0 = sand.u32 1, %s1357_s10  }
  0x31   : > { %s904_s23 = sshll.u32 %s1498_s0, 9  ;;  %s168_s30 = scalar_lea.sflag [#allocation3], %s1498_s0 }
  0x32   : > { %s1504_s24 = scalar_lea.vmem [#allocation6], %s904_s23 }
  0x33   : > { %1344 = dma.done.wait (%p1441_p7), %s168_s30, 8192  }
  0x34   : > { %1346 = vsyncadd (%p1441_p7), %s168_s30, 4294959104 }
  0x35   : > { %176 = sfence }
  0x36   : > { %s197_s18 = sld [smem:[#allocation2]]  ;;  %v199_v0 = vld [vmem:[%s1504_s24] sm:$0xff]  ;;  %v200_v1 = vld [vmem:[%s1504_s24 + $0x8] sm:$0xff]  ;;  %v201_v2 = vld [vmem:[%s1504_s24 + $0x10] sm:$0xff]  ;;  %s1593_s19 = scalar_lea.vmem [#allocation7], %s904_s23 }
  0x37   : > { %s906_s22 = sld [smem:[#allocation2 + $0x1]]  ;;  %v202_v3 = vld [vmem:[%s1504_s24 + $0x18] sm:$0xff]  ;;  %v203_v4 = vld [vmem:[%s1504_s24 + $0x20] sm:$0xff]  ;;  %v204_v5 = vld [vmem:[%s1504_s24 + $0x28] sm:$0xff]  ;;  %s916_s3 = sshll.u32 %s1365_s12, 13 }
  0x38   : > { %v205_v6 = vld [vmem:[%s1504_s24 + $0x30] sm:$0xff]  ;;  %v206_v8 = vld [vmem:[%s1504_s24 + $0x38] sm:$0xff]  ;;  %v207_v21 = vld [vmem:[%s1504_s24 + $0x40] sm:$0xff]  ;;  %s794_s4 = sshll.u32 %s1593_s19, 4  ;;  %s1776_s7 = scalar_lea.hbm %s1831_s2, %s916_s3  ;;  %s1778_s4 = int_to_ptr.vmem [resolvable:$true] %s794_s4 }
  0x39   : > { %v208_v26 = vld [vmem:[%s1504_s24 + $0x48] sm:$0xff]  ;;  %v209_v27 = vld [vmem:[%s1504_s24 + $0x50] sm:$0xff]  ;;  %v210_v28 = vld [vmem:[%s1504_s24 + $0x58] sm:$0xff]  ;;  %s778_s12 = scalar_lea.sflag [#allocation4], %s1498_s0  ;;  %s1289_s8 = scalar_lea.vmem %s1778_s4, 8192 }
  0x3a   : > { %v211_v36 = vld [vmem:[%s1504_s24 + $0x60] sm:$0xff]  ;;  %v212_v37 = vld [vmem:[%s1504_s24 + $0x68] sm:$0xff]  ;;  %v213_v47 = vld [vmem:[%s1504_s24 + $0x70] sm:$0xff]  ;;  %p1290_p3 = scmp.ne.s32.totalorder %s1778_s4, %s1289_s8  ;;  %s1379_s16 = smov [#allocation7]  }
  0x3b   : > { %v214_v51 = vld [vmem:[%s1504_s24 + $0x78] sm:$0xff]  ;;  %s1293_s27 = sshll.u32 %s1379_s16, 4  ;;  %s1294_s27 = int_to_ptr.vmem [resolvable:$false] %s1293_s27 }
  0x3c   : > { %v1517_v7 = vstv %s197_s18  ;;  %p1291_p7 = pnand %p1290_p3, %p1445_p8  ;;  %s1295_s28 = scalar_lea.vmem %s1294_s27, 16384 }
  0x3d   : > { %v264_v9 = vsub.f32 %v199_v0, %v1517_v7  ;;  %v1521_v10 = vstv %s906_s22  ;;  %v265_v11 = vsub.f32 %v200_v1, %v1517_v7  ;;  %v266_v12 = vsub.f32 %v201_v2, %v1517_v7  ;;  %p1296_p12 = scmp.lt.s32.totalorder %s1778_s4, %s1294_s27  ;;  %p1297_p13 = scmp.lt.s32.totalorder %s1295_s28, %s1289_s8 }
  0x3e   : > { %v267_v13 = vsub.f32 %v202_v3, %v1517_v7  ;;  %v268_v14 = vsub.f32 %v203_v4, %v1517_v7  ;;  %v269_v15 = vsub.f32 %v204_v5, %v1517_v7  ;;  %v270_v16 = vsub.f32 %v205_v6, %v1517_v7  ;;  %p1292_p9 = pneg %p1291_p7 }
  0x3f   : > { %v329_v17 = vmul.f32 %v1521_v10, %v264_v9  ;;  %v330_v18 = vmul.f32 %v1521_v10, %v265_v11  ;;  %v331_v19 = vmul.f32 %v1521_v10, %v266_v12  ;;  %v271_v20 = vsub.f32 %v206_v8, %v1517_v7  ;;  %v215_v8 = vld [vmem:[%s1504_s24 + $0x80] sm:$0xff]  ;;  %v216_v12 = vld [vmem:[%s1504_s24 + $0x88] sm:$0xff]  ;;  %p1298_p2 = por %p1297_p13, %p1296_p12 }
  0x40   : > { %v332_v22 = vmul.f32 %v1521_v10, %v267_v13  ;;  %v333_v23 = vmul.f32 %v1521_v10, %v268_v14  ;;  %v334_v24 = vmul.f32 %v1521_v10, %v269_v15  ;;  %v335_v25 = vmul.f32 %v1521_v10, %v270_v16  ;;  %v217_v15 = vld [vmem:[%s1504_s24 + $0x90] sm:$0xff] }
  0x41   : > { %v393_v29 = vmul.f32 1.442695, %v329_v17  ;;  %v395_v30 = vmul.f32 1.442695, %v330_v18  ;;  %v397_v31 = vmul.f32 1.442695, %v331_v19  ;;  %v336_v34 = vmul.f32 %v1521_v10, %v271_v20  ;;  %p1299_p5 = pnand %p1298_p2, %p1292_p9 }
  0x42   : > { %v399_v32 = vmul.f32 1.442695, %v332_v22  ;;  %v401_v33 = vmul.f32 1.442695, %v333_v23  ;;  %v272_v35 = vsub.f32 %v207_v21, %v1517_v7  ;;  %v403_v38 = vmul.f32 1.442695, %v334_v24 }
  0x43   : > { %994 = vpow2.f32 %v393_v29  ;;  %v405_v39 = vmul.f32 1.442695, %v335_v25  ;;  %v273_v40 = vsub.f32 %v208_v26, %v1517_v7  ;;  %v274_v42 = vsub.f32 %v209_v27, %v1517_v7  ;;  %v218_v19 = vld [vmem:[%s1504_s24 + $0x98] sm:$0xff]  ;;  %v219_v29 = vld [vmem:[%s1504_s24 + $0xa0] sm:$0xff] }
  0x44   : > { %996 = vpow2.f32 %v395_v30  ;;  %v337_v41 = vmul.f32 %v1521_v10, %v272_v35  ;;  %v275_v43 = vsub.f32 %v210_v28, %v1517_v7  ;;  %v276_v45 = vsub.f32 %v211_v36, %v1517_v7 }
  0x45   : > { %998 = vpow2.f32 %v397_v31  ;;  %v338_v44 = vmul.f32 %v1521_v10, %v273_v40  ;;  %v277_v46 = vsub.f32 %v212_v37, %v1517_v7  ;;  %v407_v48 = vmul.f32 1.442695, %v336_v34  ;;  %v221_v37 = vld [vmem:[%s1504_s24 + $0xb0] sm:$0xff] }
  0x46   : > { %1000 = vpow2.f32 %v399_v32  ;;  %v339_v49 = vmul.f32 %v1521_v10, %v274_v42  ;;  %v340_v50 = vmul.f32 %v1521_v10, %v275_v43  ;;  %v409_v52 = vmul.f32 1.442695, %v337_v41  ;;  %v222_v42 = vld [vmem:[%s1504_s24 + $0xb8] sm:$0xff] }
  0x47   : > { %1002 = vpow2.f32 %v401_v33  ;;  %v341_v53 = vmul.f32 %v1521_v10, %v276_v45  ;;  %v411_v54 = vmul.f32 1.442695, %v338_v44  ;;  %v342_v55 = vmul.f32 %v1521_v10, %v277_v46  ;;  %v220_v33 = vld [vmem:[%s1504_s24 + $0xa8] sm:$0xff] }
  0x48   : > { %1004 = vpow2.f32 %v403_v38  ;;  %v278_v56 = vsub.f32 %v213_v47, %v1517_v7  ;;  %v413_v57 = vmul.f32 1.442695, %v339_v49  ;;  %v279_v58 = vsub.f32 %v214_v51, %v1517_v7  ;;  %v223_v47 = vld [vmem:[%s1504_s24 + $0xc0] sm:$0xff] }
  0x49   : > { %1006 = vpow2.f32 %v405_v39  ;;  %v415_v59 = vmul.f32 1.442695, %v340_v50  ;;  %v417_v61 = vmul.f32 1.442695, %v341_v53  ;;  %v419_v63 = vmul.f32 1.442695, %v342_v55 }
  0x4a   : > { %1008 = vpow2.f32 %v407_v48  ;;  %v343_v60 = vmul.f32 %v1521_v10, %v278_v56  ;;  %v344_v62 = vmul.f32 %v1521_v10, %v279_v58  ;;  %v280_v18 = vsub.f32 %v215_v8, %v1517_v7 }
  0x4b   : > { %1010 = vpow2.f32 %v409_v52  ;;  %v281_v22 = vsub.f32 %v216_v12, %v1517_v7  ;;  %v282_v25 = vsub.f32 %v217_v15, %v1517_v7  ;;  %v283_v28 = vsub.f32 %v218_v19, %v1517_v7  ;;  %v224_v52 = vld [vmem:[%s1504_s24 + $0xc8] sm:$0xff]  ;;  %v229_v15 = vld [vmem:[%s1504_s24 + $0xf0] sm:$0xff] }
  0x4c   : > { %1012 = vpow2.f32 %v411_v54  ;;  %v421_v0 = vmul.f32 1.442695, %v343_v60  ;;  %v423_v1 = vmul.f32 1.442695, %v344_v62  ;;  %v345_v32 = vmul.f32 %v1521_v10, %v280_v18  ;;  %v226_v62 = vld [vmem:[%s1504_s24 + $0xd8] sm:$0xff] }
  0x4d   : > { %1014 = vpow2.f32 %v413_v57  ;;  %v346_v36 = vmul.f32 %v1521_v10, %v281_v22  ;;  %v347_v40 = vmul.f32 %v1521_v10, %v282_v25  ;;  %v284_v41 = vsub.f32 %v219_v29, %v1517_v7  ;;  %v225_v57 = vld [vmem:[%s1504_s24 + $0xd0] sm:$0xff] }
  0x4e   : > { %1016 = vpow2.f32 %v415_v59  ;;  %v348_v45 = vmul.f32 %v1521_v10, %v283_v28  ;;  %v285_v46 = vsub.f32 %v220_v33, %v1517_v7  ;;  %v425_v50 = vmul.f32 1.442695, %v345_v32 }
  0x4f   : > { %1018 = vpow2.f32 %v417_v61  ;;  %v286_v51 = vsub.f32 %v221_v37, %v1517_v7  ;;  %v427_v55 = vmul.f32 1.442695, %v346_v36  ;;  %v287_v56 = vsub.f32 %v222_v42, %v1517_v7 }
  0x50   : > { %v995_v2 = vpop.eup %994  ;;  %1020 = vpow2.f32 %v419_v63  ;;  %v349_v60 = vmul.f32 %v1521_v10, %v284_v41  ;;  %v288_v61 = vsub.f32 %v223_v47, %v1517_v7  ;;  %v290_v8 = vsub.f32 %v225_v57, %v1517_v7 }
  0x51   : > { %v997_v3 = vpop.eup %996  ;;  %v521_v4 = vadd.f32 1.0, %v995_v2  ;;  %1022 = vpow2.f32 %v421_v0  ;;  %v289_v2 = vsub.f32 %v224_v52, %v1517_v7  ;;  %v431_v12 = vmul.f32 1.442695, %v348_v45 }
  0x52   : > { %v999_v5 = vpop.eup %998  ;;  %v522_v6 = vadd.f32 1.0, %v997_v3  ;;  %1024 = vpow2.f32 %v423_v1  ;;  %v350_v1 = vmul.f32 %v1521_v10, %v285_v46  ;;  %v227_v3 = vld [vmem:[%s1504_s24 + $0xe0] sm:$0xff]  ;;  %v353_v18 = vmul.f32 %v1521_v10, %v288_v61 }
  0x53   : > { %v1001_v9 = vpop.eup %1000  ;;  %1026 = vrcp.f32 %v521_v4  ;;  %v523_v11 = vadd.f32 1.0, %v999_v5  ;;  %v429_v5 = vmul.f32 1.442695, %v347_v40  ;;  %v292_v19 = vsub.f32 %v227_v3, %v1517_v7 }
  0x54   : > { %v1003_v13 = vpop.eup %1002  ;;  %1028 = vrcp.f32 %v522_v6  ;;  %v524_v14 = vadd.f32 1.0, %v1001_v9  ;;  %v351_v6 = vmul.f32 %v1521_v10, %v286_v51  ;;  %v228_v9 = vld [vmem:[%s1504_s24 + $0xe8] sm:$0xff]  ;;  %v435_v22 = vmul.f32 1.442695, %v350_v1 }
  0x55   : > { %v1005_v16 = vpop.eup %1004  ;;  %1030 = vrcp.f32 %v523_v11  ;;  %v525_v17 = vadd.f32 1.0, %v1003_v13  ;;  %v352_v13 = vmul.f32 %v1521_v10, %v287_v56  ;;  %v294_v28 = vsub.f32 %v229_v15, %v1517_v7  ;;  %v232_v1 = vld [vmem:[%s1504_s24 + $0x108] sm:$0xff] }
  0x56   : > { %v1007_v20 = vpop.eup %1006  ;;  %1032 = vrcp.f32 %v524_v14  ;;  %v526_v21 = vadd.f32 1.0, %v1005_v16  ;;  %v291_v14 = vsub.f32 %v226_v62, %v1517_v7 }
  0x57   : > { %v1009_v23 = vpop.eup %1008  ;;  %1034 = vrcp.f32 %v525_v17  ;;  %v527_v24 = vadd.f32 1.0, %v1007_v20  ;;  %v433_v17 = vmul.f32 1.442695, %v349_v60  ;;  %v230_v20 = vld [vmem:[%s1504_s24 + $0xf8] sm:$0xff]  ;;  %v359_v41 = vmul.f32 %v1521_v10, %v294_v28 }
  0x58   : > { %v1011_v26 = vpop.eup %1010  ;;  %1036 = vrcp.f32 %v526_v21  ;;  %v528_v27 = vadd.f32 1.0, %v1009_v23  ;;  %v354_v23 = vmul.f32 %v1521_v10, %v289_v2  ;;  %v295_v32 = vsub.f32 %v230_v20, %v1517_v7 }
  0x59   : > { %v1013_v30 = vpop.eup %1012  ;;  %1038 = vrcp.f32 %v527_v24  ;;  %v529_v31 = vadd.f32 1.0, %v1011_v26  ;;  %v293_v24 = vsub.f32 %v228_v9, %v1517_v7  ;;  %v437_v26 = vmul.f32 1.442695, %v351_v6 }
  0x5a   : > { %v1015_v34 = vpop.eup %1014  ;;  %1040 = vrcp.f32 %v528_v27  ;;  %v530_v35 = vadd.f32 1.0, %v1013_v30  ;;  %v355_v27 = vmul.f32 %v1521_v10, %v290_v8  ;;  %v439_v30 = vmul.f32 1.442695, %v352_v13  ;;  %v234_v8 = vld [vmem:[%s1504_s24 + $0x118] sm:$0xff] }
  0x5b   : > { %v1017_v38 = vpop.eup %1016  ;;  %1042 = vrcp.f32 %v529_v31  ;;  %v531_v39 = vadd.f32 1.0, %v1015_v34  ;;  %v356_v31 = vmul.f32 %v1521_v10, %v291_v14  ;;  %v441_v34 = vmul.f32 1.442695, %v353_v18  ;;  %v235_v14 = vld [vmem:[%s1504_s24 + $0x120] sm:$0xff] }
  0x5c   : > { %v1019_v43 = vpop.eup %1018  ;;  %1044 = vrcp.f32 %v530_v35  ;;  %v532_v44 = vadd.f32 1.0, %v1017_v38  ;;  %v357_v35 = vmul.f32 %v1521_v10, %v292_v19  ;;  %v443_v37 = vmul.f32 1.442695, %v354_v23 }
  0x5d   : > { %v1021_v48 = vpop.eup %1020  ;;  %1046 = vrcp.f32 %v531_v39  ;;  %v533_v49 = vadd.f32 1.0, %v1019_v43  ;;  %v358_v38 = vmul.f32 %v1521_v10, %v293_v24  ;;  %v445_v40 = vmul.f32 1.442695, %v355_v27 }
  0x5e   : > { %v1023_v53 = vpop.eup %1022  ;;  %1048 = vrcp.f32 %v532_v44  ;;  %v534_v54 = vadd.f32 1.0, %v1021_v48  ;;  %v447_v43 = vmul.f32 1.442695, %v356_v31  ;;  %v360_v44 = vmul.f32 %v1521_v10, %v295_v32 }
  0x5f   : > { %v1025_v58 = vpop.eup %1024  ;;  %1050 = vrcp.f32 %v533_v49  ;;  %v535_v59 = vadd.f32 1.0, %v1023_v53  ;;  %v449_v46 = vmul.f32 1.442695, %v357_v35  ;;  %v451_v48 = vmul.f32 1.442695, %v358_v38  ;;  %v239_v35 = vld [vmem:[%s1504_s24 + $0x140] sm:$0xff] }
  0x60   : > { %v1027_v63 = vpop.eup %1026  ;;  %1052 = vrcp.f32 %v534_v54  ;;  %v536_v0 = vadd.f32 1.0, %v1025_v58  ;;  %v455_v52 = vmul.f32 1.442695, %v360_v44  ;;  %v297_v13 = vsub.f32 %v232_v1, %v1517_v7  ;;  %v245_v1 = vld [vmem:[%s1504_s24 + $0x170] sm:$0xff] }
  0x61   : > { %v1029_v4 = vpop.eup %1028  ;;  %713 = vst [vmem:[%s1593_s19] sm:$0xff] %v1027_v63  ;;  %1054 = vrcp.f32 %v535_v59  ;;  %v299_v20 = vsub.f32 %v234_v8, %v1517_v7  ;;  %v300_v24 = vsub.f32 %v235_v14, %v1517_v7 }
  0x62   : > { %v1031_v11 = vpop.eup %1030  ;;  %714 = vst [vmem:[%s1593_s19 + $0x8] sm:$0xff] %v1029_v4  ;;  %1056 = vrcp.f32 %v536_v0  ;;  %v233_v4 = vld [vmem:[%s1504_s24 + $0x110] sm:$0xff] }
  0x63   : > { %v1033_v16 = vpop.eup %1032  ;;  %715 = vst [vmem:[%s1593_s19 + $0x10] sm:$0xff] %v1031_v11  ;;  %1058 = vpow2.f32 %v425_v50  ;;  %v453_v50 = vmul.f32 1.442695, %v359_v41  ;;  %v364_v38 = vmul.f32 %v1521_v10, %v299_v20 }
  0x64   : > { %v1035_v21 = vpop.eup %1034  ;;  %716 = vst [vmem:[%s1593_s19 + $0x18] sm:$0xff] %v1033_v16  ;;  %1060 = vpow2.f32 %v427_v55  ;;  %v231_v55 = vld [vmem:[%s1504_s24 + $0x100] sm:$0xff] }
  0x65   : > { %v1037_v25 = vpop.eup %1036  ;;  %717 = vst [vmem:[%s1593_s19 + $0x20] sm:$0xff] %v1035_v21  ;;  %1062 = vpow2.f32 %v429_v5  ;;  %v296_v62 = vsub.f32 %v231_v55, %v1517_v7  ;;  %v236_v21 = vld [vmem:[%s1504_s24 + $0x128] sm:$0xff]  ;;  %v243_v55 = vld [vmem:[%s1504_s24 + $0x160] sm:$0xff] }
  0x66   : > { %v1039_v29 = vpop.eup %1038  ;;  %718 = vst [vmem:[%s1593_s19 + $0x28] sm:$0xff] %v1037_v25  ;;  %1064 = vpow2.f32 %v431_v12  ;;  %v237_v25 = vld [vmem:[%s1504_s24 + $0x130] sm:$0xff] }
  0x67   : > { %v1041_v33 = vpop.eup %1040  ;;  %719 = vst [vmem:[%s1593_s19 + $0x30] sm:$0xff] %v1039_v29  ;;  %1066 = vpow2.f32 %v433_v17  ;;  %v361_v12 = vmul.f32 %v1521_v10, %v296_v62  ;;  %v298_v17 = vsub.f32 %v233_v4, %v1517_v7  ;;  %v362_v29 = vmul.f32 %v1521_v10, %v297_v13 }
  0x68   : > { %v1043_v36 = vpop.eup %1042  ;;  %720 = vst [vmem:[%s1593_s19 + $0x38] sm:$0xff] %v1041_v33  ;;  %1068 = vpow2.f32 %v435_v22  ;;  %v463_v62 = vmul.f32 1.442695, %v364_v38 }
  0x69   : > { %v1045_v39 = vpop.eup %1044  ;;  %721 = vst [vmem:[%s1593_s19 + $0x40] sm:$0xff] %v1043_v36  ;;  %1070 = vpow2.f32 %v437_v26  ;;  %v457_v28 = vmul.f32 1.442695, %v361_v12  ;;  %v363_v33 = vmul.f32 %v1521_v10, %v298_v17 }
  0x6a   : > { %v1047_v42 = vpop.eup %1046  ;;  %722 = vst [vmem:[%s1593_s19 + $0x48] sm:$0xff] %v1045_v39  ;;  %1072 = vpow2.f32 %v439_v30  ;;  %v238_v30 = vld [vmem:[%s1504_s24 + $0x138] sm:$0xff]  ;;  %v302_v39 = vsub.f32 %v237_v25, %v1517_v7 }
  0x6b   : > { %v1049_v45 = vpop.eup %1048  ;;  %723 = vst [vmem:[%s1593_s19 + $0x50] sm:$0xff] %v1047_v42  ;;  %1074 = vpow2.f32 %v441_v34  ;;  %v301_v34 = vsub.f32 %v236_v21, %v1517_v7  ;;  %v303_v44 = vsub.f32 %v238_v30, %v1517_v7 }
  0x6c   : > { %v1051_v47 = vpop.eup %1050  ;;  %724 = vst [vmem:[%s1593_s19 + $0x58] sm:$0xff] %v1049_v45  ;;  %1076 = vpow2.f32 %v443_v37  ;;  %v241_v45 = vld [vmem:[%s1504_s24 + $0x150] sm:$0xff] }
  0x6d   : > { %v1053_v49 = vpop.eup %1052  ;;  %725 = vst [vmem:[%s1593_s19 + $0x60] sm:$0xff] %v1051_v47  ;;  %1078 = vpow2.f32 %v445_v40  ;;  %v240_v40 = vld [vmem:[%s1504_s24 + $0x148] sm:$0xff] }
  0x6e   : > { %v1055_v51 = vpop.eup %1054  ;;  %726 = vst [vmem:[%s1593_s19 + $0x68] sm:$0xff] %v1053_v49  ;;  %1080 = vpow2.f32 %v447_v43  ;;  %v365_v43 = vmul.f32 %v1521_v10, %v300_v24  ;;  %v304_v49 = vsub.f32 %v239_v35, %v1517_v7 }
  0x6f   : > { %v1057_v53 = vpop.eup %1056  ;;  %727 = vst [vmem:[%s1593_s19 + $0x70] sm:$0xff] %v1055_v51  ;;  %1082 = vpow2.f32 %v449_v46 }
  0x70   : > { %v1059_v54 = vpop.eup %1058  ;;  %728 = vst [vmem:[%s1593_s19 + $0x78] sm:$0xff] %v1057_v53  ;;  %1084 = vpow2.f32 %v451_v48  ;;  %v459_v48 = vmul.f32 1.442695, %v362_v29  ;;  %v366_v53 = vmul.f32 %v1521_v10, %v301_v34  ;;  %v369_v4 = vmul.f32 %v1521_v10, %v304_v49 }
  0x71   : > { %v1061_v56 = vpop.eup %1060  ;;  %v537_v57 = vadd.f32 1.0, %v1059_v54  ;;  %1086 = vpow2.f32 %v453_v50  ;;  %v242_v50 = vld [vmem:[%s1504_s24 + $0x158] sm:$0xff]  ;;  %v305_v54 = vsub.f32 %v240_v40, %v1517_v7 }
  0x72   : > { %v1063_v58 = vpop.eup %1062  ;;  %v538_v59 = vadd.f32 1.0, %v1061_v56  ;;  %1088 = vpow2.f32 %v455_v52 }
  0x73   : > { %v1065_v60 = vpop.eup %1064  ;;  %1090 = vrcp.f32 %v537_v57  ;;  %v539_v61 = vadd.f32 1.0, %v1063_v58  ;;  %v461_v57 = vmul.f32 1.442695, %v363_v33  ;;  %v367_v58 = vmul.f32 %v1521_v10, %v302_v39 }
  0x74   : > { %v1067_v63 = vpop.eup %1066  ;;  %1092 = vrcp.f32 %v538_v59  ;;  %v540_v0 = vadd.f32 1.0, %v1065_v60  ;;  %v306_v59 = vsub.f32 %v241_v45, %v1517_v7  ;;  %v244_v60 = vld [vmem:[%s1504_s24 + $0x168] sm:$0xff] }
  0x75   : > { %v1069_v2 = vpop.eup %1068  ;;  %1094 = vrcp.f32 %v539_v61  ;;  %v541_v3 = vadd.f32 1.0, %v1067_v63  ;;  %v368_v63 = vmul.f32 %v1521_v10, %v303_v44  ;;  %v309_v12 = vsub.f32 %v244_v60, %v1517_v7 }
  0x76   : > { %v1071_v5 = vpop.eup %1070  ;;  %1096 = vrcp.f32 %v540_v0  ;;  %v542_v6 = vadd.f32 1.0, %v1069_v2  ;;  %v307_v0 = vsub.f32 %v242_v50, %v1517_v7  ;;  %v469_v14 = vmul.f32 1.442695, %v367_v58 }
  0x77   : > { %v1073_v9 = vpop.eup %1072  ;;  %1098 = vrcp.f32 %v541_v3  ;;  %v543_v11 = vadd.f32 1.0, %v1071_v5  ;;  %v465_v3 = vmul.f32 1.442695, %v365_v43  ;;  %v308_v5 = vsub.f32 %v243_v55, %v1517_v7  ;;  %v247_v43 = vld [vmem:[%s1504_s24 + $0x180] sm:$0xff] }
  0x78   : > { %v1075_v15 = vpop.eup %1074  ;;  %1100 = vrcp.f32 %v542_v6  ;;  %v544_v16 = vadd.f32 1.0, %v1073_v9  ;;  %v246_v6 = vld [vmem:[%s1504_s24 + $0x178] sm:$0xff]  ;;  %v467_v9 = vmul.f32 1.442695, %v366_v53 }
  0x79   : > { %v1077_v18 = vpop.eup %1076  ;;  %1102 = vrcp.f32 %v543_v11  ;;  %v545_v19 = vadd.f32 1.0, %v1075_v15  ;;  %v370_v11 = vmul.f32 %v1521_v10, %v305_v54  ;;  %v371_v15 = vmul.f32 %v1521_v10, %v306_v59 }
  0x7a   : > { %v1079_v22 = vpop.eup %1078  ;;  %1104 = vrcp.f32 %v544_v16  ;;  %v546_v23 = vadd.f32 1.0, %v1077_v18  ;;  %v310_v16 = vsub.f32 %v245_v1, %v1517_v7  ;;  %v471_v18 = vmul.f32 1.442695, %v368_v63  ;;  %v250_v63 = vld [vmem:[%s1504_s24 + $0x198] sm:$0xff] }
  0x7b   : > { %v1081_v26 = vpop.eup %1080  ;;  %1106 = vrcp.f32 %v545_v19  ;;  %v547_v27 = vadd.f32 1.0, %v1079_v22  ;;  %v372_v19 = vmul.f32 %v1521_v10, %v307_v0  ;;  %v311_v20 = vsub.f32 %v246_v6, %v1517_v7 }
  0x7c   : > { %v1083_v31 = vpop.eup %1082  ;;  %1108 = vrcp.f32 %v546_v23  ;;  %v548_v32 = vadd.f32 1.0, %v1081_v26  ;;  %v473_v22 = vmul.f32 1.442695, %v369_v4  ;;  %v373_v23 = vmul.f32 %v1521_v10, %v308_v5 }
  0x7d   : > { %v1085_v36 = vpop.eup %1084  ;;  %1110 = vrcp.f32 %v547_v27  ;;  %v549_v37 = vadd.f32 1.0, %v1083_v31  ;;  %v475_v25 = vmul.f32 1.442695, %v370_v11  ;;  %v374_v26 = vmul.f32 %v1521_v10, %v309_v12 }
  0x7e   : > { %v1087_v41 = vpop.eup %1086  ;;  %1112 = vrcp.f32 %v548_v32  ;;  %v550_v42 = vadd.f32 1.0, %v1085_v36  ;;  %v375_v29 = vmul.f32 %v1521_v10, %v310_v16  ;;  %v479_v31 = vmul.f32 1.442695, %v372_v19 }
  0x7f   : > { %v1089_v46 = vpop.eup %1088  ;;  %1114 = vrcp.f32 %v549_v37  ;;  %v551_v47 = vadd.f32 1.0, %v1087_v41  ;;  %v376_v32 = vmul.f32 %v1521_v10, %v311_v20  ;;  %v481_v34 = vmul.f32 1.442695, %v373_v23  ;;  %v255_v23 = vld [vmem:[%s1504_s24 + $0x1c0] sm:$0xff] }
  0x80   : > { %v1091_v51 = vpop.eup %1090  ;;  %1116 = vrcp.f32 %v550_v42  ;;  %v552_v52 = vadd.f32 1.0, %v1089_v46  ;;  %v483_v36 = vmul.f32 1.442695, %v374_v26  ;;  %v485_v38 = vmul.f32 1.442695, %v375_v29 }
  0x81   : > { %v1093_v56 = vpop.eup %1092  ;;  %729 = vst [vmem:[%s1593_s19 + $0x80] sm:$0xff] %v1091_v51  ;;  %1118 = vrcp.f32 %v551_v47  ;;  %v487_v40 = vmul.f32 1.442695, %v376_v32  ;;  %v312_v51 = vsub.f32 %v247_v43, %v1517_v7  ;;  %v315_v12 = vsub.f32 %v250_v63, %v1517_v7  ;;  %v259_v43 = vld [vmem:[%s1504_s24 + $0x1e0] sm:$0xff] }
  0x82   : > { %v1095_v61 = vpop.eup %1094  ;;  %730 = vst [vmem:[%s1593_s19 + $0x88] sm:$0xff] %v1093_v56  ;;  %1120 = vrcp.f32 %v552_v52 }
  0x83   : > { %v1097_v2 = vpop.eup %1096  ;;  %731 = vst [vmem:[%s1593_s19 + $0x90] sm:$0xff] %v1095_v61  ;;  %1122 = vpow2.f32 %v457_v28  ;;  %v477_v28 = vmul.f32 1.442695, %v371_v15 }
  0x84   : > { %v1099_v8 = vpop.eup %1098  ;;  %732 = vst [vmem:[%s1593_s19 + $0x98] sm:$0xff] %v1097_v2  ;;  %1124 = vpow2.f32 %v459_v48  ;;  %v248_v48 = vld [vmem:[%s1504_s24 + $0x188] sm:$0xff] }
  0x85   : > { %v1101_v13 = vpop.eup %1100  ;;  %733 = vst [vmem:[%s1593_s19 + $0xa0] sm:$0xff] %v1099_v8  ;;  %1126 = vpow2.f32 %v461_v57  ;;  %v313_v56 = vsub.f32 %v248_v48, %v1517_v7  ;;  %v249_v57 = vld [vmem:[%s1504_s24 + $0x190] sm:$0xff]  ;;  %v252_v8 = vld [vmem:[%s1504_s24 + $0x1a8] sm:$0xff] }
  0x86   : > { %v1103_v17 = vpop.eup %1102  ;;  %734 = vst [vmem:[%s1593_s19 + $0xa8] sm:$0xff] %v1101_v13  ;;  %1128 = vpow2.f32 %v463_v62  ;;  %v377_v62 = vmul.f32 %v1521_v10, %v312_v51  ;;  %v314_v2 = vsub.f32 %v249_v57, %v1517_v7  ;;  %v253_v13 = vld [vmem:[%s1504_s24 + $0x1b0] sm:$0xff]  ;;  %v260_v48 = vld [vmem:[%s1504_s24 + $0x1e8] sm:$0xff]  ;;  %v324_v57 = vsub.f32 %v259_v43, %v1517_v7 }
  0x87   : > { %v1105_v21 = vpop.eup %1104  ;;  %735 = vst [vmem:[%s1593_s19 + $0xb0] sm:$0xff] %v1103_v17  ;;  %1130 = vpow2.f32 %v465_v3  ;;  %v251_v3 = vld [vmem:[%s1504_s24 + $0x1a0] sm:$0xff]  ;;  %v378_v6 = vmul.f32 %v1521_v10, %v313_v56 }
  0x88   : > { %v1107_v24 = vpop.eup %1106  ;;  %736 = vst [vmem:[%s1593_s19 + $0xb8] sm:$0xff] %v1105_v21  ;;  %1132 = vpow2.f32 %v467_v9  ;;  %v489_v16 = vmul.f32 1.442695, %v377_v62  ;;  %v316_v17 = vsub.f32 %v251_v3, %v1517_v7  ;;  %v379_v21 = vmul.f32 %v1521_v10, %v314_v2 }
  0x89   : > { %v1109_v27 = vpop.eup %1108  ;;  %737 = vst [vmem:[%s1593_s19 + $0xc0] sm:$0xff] %v1107_v24  ;;  %1134 = vpow2.f32 %v469_v14  ;;  %v491_v26 = vmul.f32 1.442695, %v378_v6  ;;  %v325_v62 = vsub.f32 %v260_v48, %v1517_v7 }
  0x8a   : > { %v1111_v30 = vpop.eup %1110  ;;  %738 = vst [vmem:[%s1593_s19 + $0xc8] sm:$0xff] %v1109_v27  ;;  %1136 = vpow2.f32 %v471_v18  ;;  %v254_v18 = vld [vmem:[%s1504_s24 + $0x1b8] sm:$0xff]  ;;  %v318_v27 = vsub.f32 %v253_v13, %v1517_v7 }
  0x8b   : > { %v1113_v33 = vpop.eup %1112  ;;  %739 = vst [vmem:[%s1593_s19 + $0xd0] sm:$0xff] %v1111_v30  ;;  %1138 = vpow2.f32 %v473_v22  ;;  %v317_v22 = vsub.f32 %v252_v8, %v1517_v7  ;;  %v319_v32 = vsub.f32 %v254_v18, %v1517_v7 }
  0x8c   : > { %v1115_v35 = vpop.eup %1114  ;;  %740 = vst [vmem:[%s1593_s19 + $0xd8] sm:$0xff] %v1113_v33  ;;  %1140 = vpow2.f32 %v475_v25  ;;  %v257_v33 = vld [vmem:[%s1504_s24 + $0x1d0] sm:$0xff] }
  0x8d   : > { %v1117_v37 = vpop.eup %1116  ;;  %741 = vst [vmem:[%s1593_s19 + $0xe0] sm:$0xff] %v1115_v35  ;;  %1142 = vpow2.f32 %v477_v28  ;;  %v256_v28 = vld [vmem:[%s1504_s24 + $0x1c8] sm:$0xff]  ;;  %v384_v51 = vmul.f32 %v1521_v10, %v319_v32 }
  0x8e   : > { %v1119_v39 = vpop.eup %1118  ;;  %742 = vst [vmem:[%s1593_s19 + $0xe8] sm:$0xff] %v1117_v37  ;;  %1144 = vpow2.f32 %v479_v31  ;;  %v380_v31 = vmul.f32 %v1521_v10, %v315_v12  ;;  %v320_v37 = vsub.f32 %v255_v23, %v1517_v7 }
  0x8f   : > { %v1121_v41 = vpop.eup %1120  ;;  %743 = vst [vmem:[%s1593_s19 + $0xf0] sm:$0xff] %v1119_v39  ;;  %1146 = vpow2.f32 %v481_v34 }
  0x90   : > { %v1123_v42 = vpop.eup %1122  ;;  %744 = vst [vmem:[%s1593_s19 + $0xf8] sm:$0xff] %v1121_v41  ;;  %1148 = vpow2.f32 %v483_v36  ;;  %v381_v36 = vmul.f32 %v1521_v10, %v316_v17  ;;  %v382_v41 = vmul.f32 %v1521_v10, %v317_v22  ;;  %v385_v56 = vmul.f32 %v1521_v10, %v320_v37 }
  0x91   : > { %v1125_v44 = vpop.eup %1124  ;;  %v553_v45 = vadd.f32 1.0, %v1123_v42  ;;  %1150 = vpow2.f32 %v485_v38  ;;  %v258_v38 = vld [vmem:[%s1504_s24 + $0x1d8] sm:$0xff]  ;;  %v321_v42 = vsub.f32 %v256_v28, %v1517_v7 }
  0x92   : > { %v1127_v46 = vpop.eup %1126  ;;  %v554_v47 = vadd.f32 1.0, %v1125_v44  ;;  %1152 = vpow2.f32 %v487_v40 }
  0x93   : > { %v1129_v49 = vpop.eup %1128  ;;  %1154 = vrcp.f32 %v553_v45  ;;  %v555_v50 = vadd.f32 1.0, %v1127_v46  ;;  %v493_v45 = vmul.f32 1.442695, %v379_v21  ;;  %v383_v46 = vmul.f32 %v1521_v10, %v318_v27 }
  0x94   : > { %v1131_v52 = vpop.eup %1130  ;;  %1156 = vrcp.f32 %v554_v47  ;;  %v556_v53 = vadd.f32 1.0, %v1129_v49  ;;  %v322_v47 = vsub.f32 %v257_v33, %v1517_v7 }
  0x95   : > { %v1133_v54 = vpop.eup %1132  ;;  %1158 = vrcp.f32 %v555_v50  ;;  %v557_v55 = vadd.f32 1.0, %v1131_v52  ;;  %v495_v50 = vmul.f32 1.442695, %v380_v31  ;;  %v323_v52 = vsub.f32 %v258_v38, %v1517_v7 }
  0x96   : > { %v1135_v58 = vpop.eup %1134  ;;  %1160 = vrcp.f32 %v556_v53  ;;  %v558_v59 = vadd.f32 1.0, %v1133_v54  ;;  %v261_v53 = vld [vmem:[%s1504_s24 + $0x1f0] sm:$0xff] }
  0x97   : > { %v1137_v60 = vpop.eup %1136  ;;  %1162 = vrcp.f32 %v557_v55  ;;  %v559_v61 = vadd.f32 1.0, %v1135_v58  ;;  %v497_v55 = vmul.f32 1.442695, %v381_v36  ;;  %v262_v58 = vld [vmem:[%s1504_s24 + $0x1f8] sm:$0xff]  ;;  %v326_v2 = vsub.f32 %v261_v53, %v1517_v7 }
  0x98   : > { %v1139_v0 = vpop.eup %1138  ;;  %1164 = vrcp.f32 %v558_v59  ;;  %v560_v1 = vadd.f32 1.0, %v1137_v60  ;;  %v499_v60 = vmul.f32 1.442695, %v382_v41  ;;  %v327_v6 = vsub.f32 %v262_v58, %v1517_v7 }
  0x99   : > { %v1141_v4 = vpop.eup %1140  ;;  %1166 = vrcp.f32 %v559_v61  ;;  %v561_v5 = vadd.f32 1.0, %v1139_v0  ;;  %v386_v61 = vmul.f32 %v1521_v10, %v321_v42  ;;  %v501_v0 = vmul.f32 1.442695, %v383_v46 }
  0x9a   : > { %v1143_v9 = vpop.eup %1142  ;;  %1168 = vrcp.f32 %v560_v1  ;;  %v562_v11 = vadd.f32 1.0, %v1141_v4  ;;  %v387_v1 = vmul.f32 %v1521_v10, %v322_v47  ;;  %v503_v4 = vmul.f32 1.442695, %v384_v51 }
  0x9b   : > { %v1145_v14 = vpop.eup %1144  ;;  %1170 = vrcp.f32 %v561_v5  ;;  %v563_v15 = vadd.f32 1.0, %v1143_v9  ;;  %v388_v5 = vmul.f32 %v1521_v10, %v323_v52  ;;  %v505_v9 = vmul.f32 1.442695, %v385_v56 }
  0x9c   : > { %v1147_v19 = vpop.eup %1146  ;;  %1172 = vrcp.f32 %v562_v11  ;;  %v564_v20 = vadd.f32 1.0, %v1145_v14  ;;  %v389_v11 = vmul.f32 %v1521_v10, %v324_v57  ;;  %v507_v13 = vmul.f32 1.442695, %v386_v61 }
  0x9d   : > { %v1149_v24 = vpop.eup %1148  ;;  %1174 = vrcp.f32 %v563_v15  ;;  %v565_v25 = vadd.f32 1.0, %v1147_v19  ;;  %v390_v14 = vmul.f32 %v1521_v10, %v325_v62  ;;  %v391_v7 = vmul.f32 %v1521_v10, %v326_v2 }
  0x9e   : > { %v1151_v29 = vpop.eup %1150  ;;  %1176 = vrcp.f32 %v564_v20  ;;  %v566_v30 = vadd.f32 1.0, %v1149_v24  ;;  %v511_v18 = vmul.f32 1.442695, %v388_v5  ;;  %v392_v19 = vmul.f32 %v1521_v10, %v327_v6 }
  0x9f   : > { %v1153_v34 = vpop.eup %1152  ;;  %1178 = vrcp.f32 %v565_v25  ;;  %v567_v35 = vadd.f32 1.0, %v1151_v29  ;;  %v513_v21 = vmul.f32 1.442695, %v389_v11  ;;  %v515_v23 = vmul.f32 1.442695, %v390_v14 }
  0xa0   : > { %v1155_v39 = vpop.eup %1154  ;;  %1180 = vrcp.f32 %v566_v30  ;;  %v568_v40 = vadd.f32 1.0, %v1153_v34  ;;  %v517_v25 = vmul.f32 1.442695, %v391_v7  ;;  %v519_v27 = vmul.f32 1.442695, %v392_v19 }
  0xa1   : > { %v1157_v44 = vpop.eup %1156  ;;  %745 = vst [vmem:[%s1593_s19 + $0x100] sm:$0xff] %v1155_v39  ;;  %1182 = vrcp.f32 %v567_v35 }
  0xa2   : > { %v1159_v49 = vpop.eup %1158  ;;  %746 = vst [vmem:[%s1593_s19 + $0x108] sm:$0xff] %v1157_v44  ;;  %1184 = vrcp.f32 %v568_v40 }
  0xa3   : > { %v1161_v54 = vpop.eup %1160  ;;  %747 = vst [vmem:[%s1593_s19 + $0x110] sm:$0xff] %v1159_v49  ;;  %1186 = vpow2.f32 %v489_v16  ;;  %v509_v16 = vmul.f32 1.442695, %v387_v1 }
  0xa4   : > { %v1163_v59 = vpop.eup %1162  ;;  %748 = vst [vmem:[%s1593_s19 + $0x118] sm:$0xff] %v1161_v54  ;;  %1188 = vpow2.f32 %v491_v26 }
  0xa5   : > { %v1165_v63 = vpop.eup %1164  ;;  %749 = vst [vmem:[%s1593_s19 + $0x120] sm:$0xff] %v1163_v59  ;;  %1190 = vpow2.f32 %v493_v45 }
  0xa6   : > { %v1167_v3 = vpop.eup %1166  ;;  %750 = vst [vmem:[%s1593_s19 + $0x128] sm:$0xff] %v1165_v63  ;;  %1192 = vpow2.f32 %v495_v50 }
  0xa7   : > { %v1169_v8 = vpop.eup %1168  ;;  %751 = vst [vmem:[%s1593_s19 + $0x130] sm:$0xff] %v1167_v3  ;;  %1194 = vpow2.f32 %v497_v55 }
  0xa8   : > { %v1171_v12 = vpop.eup %1170  ;;  %752 = vst [vmem:[%s1593_s19 + $0x138] sm:$0xff] %v1169_v8  ;;  %1196 = vpow2.f32 %v499_v60 }
  0xa9   : > { %v1173_v15 = vpop.eup %1172  ;;  %753 = vst [vmem:[%s1593_s19 + $0x140] sm:$0xff] %v1171_v12  ;;  %1198 = vpow2.f32 %v501_v0 }
  0xaa   : > { %v1175_v17 = vpop.eup %1174  ;;  %754 = vst [vmem:[%s1593_s19 + $0x148] sm:$0xff] %v1173_v15  ;;  %1200 = vpow2.f32 %v503_v4 }
  0xab   : > { %v1177_v20 = vpop.eup %1176  ;;  %755 = vst [vmem:[%s1593_s19 + $0x150] sm:$0xff] %v1175_v17  ;;  %1202 = vpow2.f32 %v505_v9 }
  0xac   : > { %v1179_v22 = vpop.eup %1178  ;;  %756 = vst [vmem:[%s1593_s19 + $0x158] sm:$0xff] %v1177_v20  ;;  %1204 = vpow2.f32 %v507_v13 }
  0xad   : > { %v1181_v24 = vpop.eup %1180  ;;  %757 = vst [vmem:[%s1593_s19 + $0x160] sm:$0xff] %v1179_v22  ;;  %1206 = vpow2.f32 %v509_v16 }
  0xae   : > { %v1183_v26 = vpop.eup %1182  ;;  %758 = vst [vmem:[%s1593_s19 + $0x168] sm:$0xff] %v1181_v24  ;;  %1208 = vpow2.f32 %v511_v18 }
  0xaf   : > { %v1185_v28 = vpop.eup %1184  ;;  %759 = vst [vmem:[%s1593_s19 + $0x170] sm:$0xff] %v1183_v26  ;;  %1210 = vpow2.f32 %v513_v21 }
  0xb0   : > { %v1187_v10 = vpop.eup %1186  ;;  %760 = vst [vmem:[%s1593_s19 + $0x178] sm:$0xff] %v1185_v28  ;;  %1212 = vpow2.f32 %v515_v23 }
  0xb1   : > { %v1189_v29 = vpop.eup %1188  ;;  %v569_v30 = vadd.f32 1.0, %v1187_v10  ;;  %1214 = vpow2.f32 %v517_v25 }
  0xb2   : > { %v1191_v31 = vpop.eup %1190  ;;  %v570_v32 = vadd.f32 1.0, %v1189_v29  ;;  %1216 = vpow2.f32 %v519_v27 }
  0xb3   : > { %v1193_v33 = vpop.eup %1192  ;;  %1218 = vrcp.f32 %v569_v30  ;;  %v571_v34 = vadd.f32 1.0, %v1191_v31 }
  0xb4   : > { %v1195_v35 = vpop.eup %1194  ;;  %1220 = vrcp.f32 %v570_v32  ;;  %v572_v36 = vadd.f32 1.0, %v1193_v33 }
  0xb5   : > { %v1197_v37 = vpop.eup %1196  ;;  %1222 = vrcp.f32 %v571_v34  ;;  %v573_v38 = vadd.f32 1.0, %v1195_v35 }
  0xb6   : > { %v1199_v39 = vpop.eup %1198  ;;  %1224 = vrcp.f32 %v572_v36  ;;  %v574_v40 = vadd.f32 1.0, %v1197_v37 }
  0xb7   : > { %v1201_v41 = vpop.eup %1200  ;;  %1226 = vrcp.f32 %v573_v38  ;;  %v575_v42 = vadd.f32 1.0, %v1199_v39 }
  0xb8   : > { %v1203_v43 = vpop.eup %1202  ;;  %1228 = vrcp.f32 %v574_v40  ;;  %v576_v44 = vadd.f32 1.0, %v1201_v41 }
  0xb9   : > { %v1205_v45 = vpop.eup %1204  ;;  %1230 = vrcp.f32 %v575_v42  ;;  %v577_v46 = vadd.f32 1.0, %v1203_v43 }
  0xba   : > { %v1207_v47 = vpop.eup %1206  ;;  %1232 = vrcp.f32 %v576_v44  ;;  %v578_v48 = vadd.f32 1.0, %v1205_v45 }
  0xbb   : > { %v1209_v49 = vpop.eup %1208  ;;  %1234 = vrcp.f32 %v577_v46  ;;  %v579_v50 = vadd.f32 1.0, %v1207_v47 }
  0xbc   : > { %v1211_v51 = vpop.eup %1210  ;;  %1236 = vrcp.f32 %v578_v48  ;;  %v580_v52 = vadd.f32 1.0, %v1209_v49 }
  0xbd   : > { %v1213_v53 = vpop.eup %1212  ;;  %1238 = vrcp.f32 %v579_v50  ;;  %v581_v54 = vadd.f32 1.0, %v1211_v51 }
  0xbe   : > { %v1215_v55 = vpop.eup %1214  ;;  %1240 = vrcp.f32 %v580_v52  ;;  %v582_v56 = vadd.f32 1.0, %v1213_v53 }
  0xbf   : > { %v1217_v57 = vpop.eup %1216  ;;  %1242 = vrcp.f32 %v581_v54  ;;  %v583_v58 = vadd.f32 1.0, %v1215_v55 }
  0xc0   : > { %v1219_v59 = vpop.eup %1218  ;;  %1244 = vrcp.f32 %v582_v56  ;;  %v584_v60 = vadd.f32 1.0, %v1217_v57 }
  0xc1   : > { %v1221_v61 = vpop.eup %1220  ;;  %761 = vst [vmem:[%s1593_s19 + $0x180] sm:$0xff] %v1219_v59  ;;  %1246 = vrcp.f32 %v583_v58 }
  0xc2   : > { %v1223_v62 = vpop.eup %1222  ;;  %762 = vst [vmem:[%s1593_s19 + $0x188] sm:$0xff] %v1221_v61  ;;  %1248 = vrcp.f32 %v584_v60 }
  0xc3   : > { %v1225_v63 = vpop.eup %1224  ;;  %763 = vst [vmem:[%s1593_s19 + $0x190] sm:$0xff] %v1223_v62 }
  0xc4   : > { %v1227_v0 = vpop.eup %1226  ;;  %764 = vst [vmem:[%s1593_s19 + $0x198] sm:$0xff] %v1225_v63 }
  0xc5   : > { %v1229_v1 = vpop.eup %1228  ;;  %765 = vst [vmem:[%s1593_s19 + $0x1a0] sm:$0xff] %v1227_v0 }
  0xc6   : > { %v1231_v2 = vpop.eup %1230  ;;  %766 = vst [vmem:[%s1593_s19 + $0x1a8] sm:$0xff] %v1229_v1 }
  0xc7   : > { %v1233_v3 = vpop.eup %1232  ;;  %767 = vst [vmem:[%s1593_s19 + $0x1b0] sm:$0xff] %v1231_v2 }
  0xc8   : > { %v1235_v4 = vpop.eup %1234  ;;  %768 = vst [vmem:[%s1593_s19 + $0x1b8] sm:$0xff] %v1233_v3 }
  0xc9   : > { %v1237_v5 = vpop.eup %1236  ;;  %769 = vst [vmem:[%s1593_s19 + $0x1c0] sm:$0xff] %v1235_v4 }
  0xca   : > { %v1239_v6 = vpop.eup %1238  ;;  %770 = vst [vmem:[%s1593_s19 + $0x1c8] sm:$0xff] %v1237_v5 }
  0xcb   : > { %v1241_v8 = vpop.eup %1240  ;;  %771 = vst [vmem:[%s1593_s19 + $0x1d0] sm:$0xff] %v1239_v6 }
  0xcc   : > { %v1243_v9 = vpop.eup %1242  ;;  %772 = vst [vmem:[%s1593_s19 + $0x1d8] sm:$0xff] %v1241_v8 }
  0xcd   : > { %v1245_v11 = vpop.eup %1244  ;;  %773 = vst [vmem:[%s1593_s19 + $0x1e0] sm:$0xff] %v1243_v9 }
  0xce   : > { %v1247_v12 = vpop.eup %1246  ;;  %774 = vst [vmem:[%s1593_s19 + $0x1e8] sm:$0xff] %v1245_v11 }
  0xcf   : > { %v1249_v13 = vpop.eup %1248  ;;  %775 = vst [vmem:[%s1593_s19 + $0x1f0] sm:$0xff] %v1247_v12 }
  0xd0   : > { %776 = vst [vmem:[%s1593_s19 + $0x1f8] sm:$0xff] %v1249_v13 }
  0xd1   : > { %1302 = shalt.err (!%p1299_p5)
}
  0xd2   : > { %s1303_s29 = scalar_lea.hbm %s1776_s7, 8192  ;;  %s1307_s23 = scalar_lea.hbm %s1831_s2, 16384 }
  0xd3   : > { %p1304_p10 = scmp.ne.s32.totalorder %s1776_s7, %s1303_s29  ;;  %p1308_p0 = scmp.lt.s32.totalorder %s1776_s7, %s1831_s2 }
  0xd4   : > { %p1309_p4 = scmp.lt.s32.totalorder %s1307_s23, %s1303_s29 }
  0xd5   : > { %p1305_p11 = pnand %p1304_p10, %p1445_p8 }
  0xd6   : > { %p1310_p6 = por %p1309_p4, %p1308_p0 }
  0xd7   : > { %p1306_p1 = pneg %p1305_p11 }
  0xd9   : > { %p1311_p3 = pnand %p1310_p6, %p1306_p1 }
  0xdb   : > { %1314 = shalt.err (!%p1311_p3)
}
  0xdc   : > { %s1380_s18 = smov 512   ;;  %s1381_s22 = smov 32  }
  0xdd   : > { %923 = dma.vmem_to_hbm [thread:$0]  (%p1445_p8), %s1778_s4, 8192, %s1776_s7, %s778_s12, %s1380_s18, %s1380_s18, %s1381_s22  }
  0xde PF: > { %s809_s19 = sand.u32 1, %s1353_s9   ;;  %p1840_p7 = scmp.ne.s32.totalorder %s1836_s21, 0 }
  0xdf   : > { %p1841_p9 = scmp.ge.s32.totalorder %s1373_s14, 2  ;;  %s810_s3 = scalar_lea.sflag [#allocation4], %s809_s19 }
  0xe1   : > { %p934_p12 = pnand %p1841_p9, %p1840_p7 }
  0xe3   : > { %p935_p13 = pneg %p934_p12 }
  0xe5   : > { %1348 = dma.done.wait (%p935_p13), %s810_s3, 8192  }
  0xe6   : > { %1350 = vsyncadd (%p935_p13), %s810_s3, 4294959104  ;;  %s19_s14 = sadd.s32 1, %s1373_s14   ;;  %s1842_s9 = smov %s1357_s10 }
  0xe7   : > { %p16_p2 = scmp.ge.s32.totalorder %s19_s14, 4   ;;  %s1843_s10 = smov %s1361_s11 }
  0xe8   : > { %s1844_s11 = smov %s1485_s15  ;;  %s1845_s12 = smov %s1369_s13 }
  0xe9   : > { %s1846_s13 = smov %s1848_s25  ;;  %18 = sbr.rel (!%p16_p2) target bundleno = 9 (0x9), region = 78 }
  0xee   :  { %815 = vsyncpa [#allocation3], 1 }
  0xef   :  { %817 = vsyncpa [#allocation3 + $0x1], 1 }
  0xf0   :  { %818 = vsyncpa [#allocation4], 1 }
  0xf1   :  { %820 = vsyncpa [#allocation4 + $0x1], 1 }
  0xf2   :  { %821 = vsyncpa [#allocation5], 1 }
  0xf3   :  { %823 = vsyncpa [#allocation5 + $0x1], 1 }

</bundles_post_ra>
